<compile_context>
chip_gen: v6e
topology: v6e:2x2x1
jax: 0.10.0
libtpu: 0.0.40
codegen_flags: <defaults>
</compile_context>

<pallas_src>
import jax
import jax.numpy as jnp
from jax import lax
from jax.experimental import pallas as pl
from jax.experimental.pallas import tpu as pltpu


def mlp_kernel(x_ref, w1_ref, b1_ref, w2_ref, b2_ref, o_ref):
    # x_ref : (tb, in_size)  natural layout -> one contiguous HBM DMA per tile
    # w1_ref: (hidden, in_size) in the MXU dtype (bf16 by default), VMEM-resident
    # b1_ref: (hidden, 1) f32, w2_ref: (1, hidden) f32, b2_ref: (1, 1) f32 in SMEM
    x = x_ref[...].astype(w1_ref.dtype)          # in-kernel cast: no extra HBM pass

    # Layer 1 on the MXU: contract in_size -> h^T = (hidden, tb), batch on lanes.
    h = lax.dot_general(
        w1_ref[...], x,
        dimension_numbers=(((1,), (1,)), ((), ())),
        preferred_element_type=jnp.float32)
    h = jnp.maximum(h + b1_ref[...], 0.0)        # f32 bias add + ReLU (VPU)

    # Layer 2 also on the MXU: (1, hidden) @ (hidden, tb) -> (1, tb) lane-dense logits.
    logits = jnp.dot(w2_ref[...], h, preferred_element_type=jnp.float32)
    o_ref[...] = jax.nn.sigmoid(logits + b2_ref[0, 0])   # EUP sigmoid, scalar bias


def _round_up(a, m):
    return ((a + m - 1) // m) * m


def binary_classifier_forward(x, w1, b1, w2, b2, *, block_b=8192,
                              matmul_dtype=jnp.bfloat16):
    """Forward pass matching PyTorch BinaryClassifier.

    x : (B, in_size) float32
    w1: (hidden, in_size)   (PyTorch nn.Linear weight layout)
    b1: (hidden,)
    w2: (1, hidden)
    b2: (1,)
    Returns (B, 1) float32 probabilities.
    """
    B, in_size = x.shape
    hidden = w1.shape[0]
    out_size = w2.shape[0]
    assert out_size == 1, "kernel specializes the binary-classifier head (out_size == 1)"

    w1_k = w1.astype(matmul_dtype)                       # tiny, VMEM-resident
    b1_k = b1.reshape(hidden, 1).astype(jnp.float32)     # lane-broadcast in kernel
    w2_k = w2.astype(jnp.float32)                        # (1, hidden) row for layer-2 dot
    b2_k = b2.reshape(1, 1).astype(jnp.float32)          # scalar bias in SMEM

    # --- batch tiling --------------------------------------------------------------
    # Lane-aligned tiles; the grid over-covers B (no jnp.pad HBM round trip).  Garbage
    # lanes in the boundary block are masked on store and cannot contaminate valid
    # lanes: the only reductions are over in_size / hidden, never across the batch.
    tb_max = max(128, (int(block_b) // 128) * 128)
    tb = min(_round_up(B, 128), tb_max)
    # Give v7x's two TensorCores >= 2 parallel grid steps whenever the batch allows it.
    if -(-B // tb) < 2 and tb > 128:
        tb = _round_up(-(-tb // 2), 128)
    grid = (pl.cdiv(B, tb),)

    # The (tb, in_size) f32 block lane-pads in_size -> 128 in VMEM; leave headroom for
    # the double buffer plus the (hidden, tb) f32 intermediate.
    xblk_bytes = tb * 128 * x.dtype.itemsize
    vmem_limit = int(min(max(4 * xblk_bytes, 32 << 20), 48 << 20))

    out_row = pl.pallas_call(
        mlp_kernel,
        out_shape=jax.ShapeDtypeStruct((1, B), jnp.float32),
        grid=grid,
        in_specs=[
            pl.BlockSpec((tb, in_size), lambda i: (i, 0)),      # x: tiled on batch
            pl.BlockSpec((hidden, in_size), lambda i: (0, 0)),  # W1: resident
            pl.BlockSpec((hidden, 1), lambda i: (0, 0)),        # b1: resident
            pl.BlockSpec((1, hidden), lambda i: (0, 0)),        # w2 row: resident
            pl.BlockSpec(memory_space=pltpu.MemorySpace.SMEM),  # b2 scalar in SMEM
        ],
        out_specs=pl.BlockSpec((1, tb), lambda i: (0, i)),      # lane-dense output slab
        compiler_params=pltpu.CompilerParams(
            dimension_semantics=("parallel",),                  # megacore split on v7x
            vmem_limit_bytes=vmem_limit,
        ),
    )(x, w1_k, b1_k, w2_k, b2_k)

    return out_row.T                                            # back to (B, 1)


if __name__ == "__main__":
    # Small shapes consistent with the module: batch=8, input=16, hidden=32, output=1
    batch, input_size, hidden_size, output_size = 8, 16, 32, 1

    key = jax.random.PRNGKey(0)
    kx, k1, k2, k3, k4 = jax.random.split(key, 5)

    x = jax.random.normal(kx, (batch, input_size), dtype=jnp.float32)

    # Deterministic parameter init (PyTorch Linear-like uniform bounds, PyTorch layout).
    bound1 = 1.0 / (input_size ** 0.5)
    bound2 = 1.0 / (hidden_size ** 0.5)
    w1 = jax.random.uniform(k1, (hidden_size, input_size), jnp.float32, -bound1, bound1)
    b1 = jax.random.uniform(k2, (hidden_size,), jnp.float32, -bound1, bound1)
    w2 = jax.random.uniform(k3, (output_size, hidden_size), jnp.float32, -bound2, bound2)
    b2 = jax.random.uniform(k4, (output_size,), jnp.float32, -bound2, bound2)

    def ref_fwd(xv):
        return jax.nn.sigmoid(jnp.maximum(xv @ w1.T + b1, 0.0) @ w2.T + b2)

    # Case 1: tiny batch, f32 MXU operands -> tight tolerance vs the f32 reference.
    out_f32 = jax.block_until_ready(
        binary_classifier_forward(x, w1, b1, w2, b2, matmul_dtype=jnp.float32))
    assert out_f32.shape == (batch, output_size)
    assert jnp.allclose(out_f32, ref_fwd(x), atol=1e-4, rtol=1e-4)

    # Case 2: default bf16 MXU operands (f32 accumulation) -> relaxed tolerance.
    out_bf16 = jax.block_until_ready(binary_classifier_forward(x, w1, b1, w2, b2))
    assert out_bf16.shape == (batch, output_size)
    assert jnp.allclose(out_bf16, ref_fwd(x), atol=3e-2)

    # Case 3: batch not a multiple of 128 -> over-covering grid with >= 2 parallel
    # steps and a masked partial boundary store (no wrapper-side pad / transpose).
    batch2 = 300
    x2 = jax.random.normal(k2, (batch2, input_size), dtype=jnp.float32)
    out2 = jax.block_until_ready(binary_classifier_forward(x2, w1, b1, w2, b2))
    assert out2.shape == (batch2, output_size)
    assert jnp.allclose(out2, ref_fwd(x2), atol=3e-2)

    # Case 4: force a multi-step grid with small tiles (exercises the pipelining path).
    out3 = jax.block_until_ready(
        binary_classifier_forward(x2, w1, b1, w2, b2, block_b=128,
                                  matmul_dtype=jnp.float32))
    assert jnp.allclose(out3, ref_fwd(x2), atol=1e-4, rtol=1e-4)

    print("KERNEL_OK")
</pallas_src>

<mosaic_0001>
module attributes {stable_mosaic.version = 11 : i64} {
  func.func @mlp_kernel(%arg0: i32, %arg1: memref<128x16xf32, #tpu.memory_space<vmem>>, %arg2: memref<32x16xf32, #tpu.memory_space<vmem>>, %arg3: memref<32x1xf32, #tpu.memory_space<vmem>>, %arg4: memref<1x32xf32, #tpu.memory_space<vmem>>, %arg5: memref<1x1xf32, #tpu.memory_space<smem>>, %arg6: memref<1x128xf32, #tpu.memory_space<vmem>>) attributes {dimension_semantics = [#tpu.dimension_semantics<parallel>], iteration_bounds = array<i64: 1>, scalar_prefetch = 0 : i64, scratch_operands = 0 : i64, tpu.core_type = #tpu.core_type<tc>, window_params = [{transform_indices = @transform_0, window_bounds = array<i64: 128, 16>}, {pipeline_mode = #tpu.pipeline_mode<synchronous>, transform_indices = @transform_1, window_bounds = array<i64: 32, 16>}, {pipeline_mode = #tpu.pipeline_mode<synchronous>, transform_indices = @transform_2, window_bounds = array<i64: 32, 1>}, {pipeline_mode = #tpu.pipeline_mode<synchronous>, transform_indices = @transform_3, window_bounds = array<i64: 1, 32>}, {transform_indices = @transform_4, window_bounds = array<i64: 1, 1>}, {transform_indices = @transform_5, window_bounds = array<i64: 1, 128>}]} {
    %c0 = arith.constant 0 : index
    %c0_0 = arith.constant 0 : index
    %0 = vector.load %arg1[%c0, %c0_0] : memref<128x16xf32, #tpu.memory_space<vmem>>, vector<128x16xf32>
    %c0_1 = arith.constant 0 : index
    %c0_2 = arith.constant 0 : index
    %1 = vector.load %arg2[%c0_1, %c0_2] : memref<32x16xf32, #tpu.memory_space<vmem>>, vector<32x16xf32>
    %cst = arith.constant dense<0.000000e+00> : vector<32x128xf32>
    %2 = tpu.matmul %1, %0, %cst {dimension_numbers = #tpu.dot_dimension_numbers<[1], [1], [0], [0], [0, 0, 1, 0], [], []>} : vector<32x16xf32>, vector<128x16xf32>, vector<32x128xf32> -> vector<32x128xf32>
    %c0_3 = arith.constant 0 : index
    %c0_4 = arith.constant 0 : index
    %3 = vector.load %arg3[%c0_3, %c0_4] : memref<32x1xf32, #tpu.memory_space<vmem>>, vector<32x1xf32>
    %4 = vector.broadcast %3 : vector<32x1xf32> to vector<32x128xf32>
    %5 = arith.addf %2, %4 : vector<32x128xf32>
    %cst_5 = arith.constant 0.000000e+00 : f32
    %6 = vector.broadcast %cst_5 : f32 to vector<32x128xf32>
    %7 = arith.maximumf %5, %6 : vector<32x128xf32>
    %c0_6 = arith.constant 0 : index
    %c0_7 = arith.constant 0 : index
    %8 = vector.load %arg4[%c0_6, %c0_7] : memref<1x32xf32, #tpu.memory_space<vmem>>, vector<1x32xf32>
    %cst_8 = arith.constant dense<0.000000e+00> : vector<1x128xf32>
    %9 = tpu.matmul %8, %7, %cst_8 {dimension_numbers = #tpu.dot_dimension_numbers<[1], [0], [0], [1], [0, 0, 1, 1], [], []>} : vector<1x32xf32>, vector<32x128xf32>, vector<1x128xf32> -> vector<1x128xf32>
    %c0_9 = arith.constant 0 : index
    %c0_10 = arith.constant 0 : index
    %10 = memref.load %arg5[%c0_9, %c0_10] : memref<1x1xf32, #tpu.memory_space<smem>>
    %11 = vector.broadcast %10 : f32 to vector<1x128xf32>
    %12 = arith.addf %9, %11 : vector<1x128xf32>
    %13 = arith.negf %12 : vector<1x128xf32>
    %14 = math.exp %13 : vector<1x128xf32>
    %cst_11 = arith.constant 1.000000e+00 : f32
    %15 = vector.broadcast %cst_11 : f32 to vector<1x128xf32>
    %16 = arith.addf %15, %14 : vector<1x128xf32>
    %17 = arith.divf %15, %16 : vector<1x128xf32>
    %c0_12 = arith.constant 0 : index
    %c0_13 = arith.constant 0 : index
    %18 = vector.load %arg6[%c0_12, %c0_13] : memref<1x128xf32, #tpu.memory_space<vmem>>, vector<1x128xf32>
    tpu.vector_store %arg6[%c0_12, %c0_13], %17 {strides = array<i32>} : memref<1x128xf32, #tpu.memory_space<vmem>>, vector<1x128xf32>,
    return
  }
  func.func @transform_0(%arg0: i32) -> (i32, i32) {
    %c0_i32 = arith.constant 0 : i32
    %c0_i32_0 = arith.constant 0 : i32
    return %arg0, %c0_i32 : i32, i32
  }
  func.func @transform_1(%arg0: i32) -> (i32, i32) {
    %c0_i32 = arith.constant 0 : i32
    %c0_i32_0 = arith.constant 0 : i32
    %c0_i32_1 = arith.constant 0 : i32
    return %c0_i32, %c0_i32_0 : i32, i32
  }
  func.func @transform_2(%arg0: i32) -> (i32, i32) {
    %c0_i32 = arith.constant 0 : i32
    %c0_i32_0 = arith.constant 0 : i32
    %c0_i32_1 = arith.constant 0 : i32
    return %c0_i32, %c0_i32_0 : i32, i32
  }
  func.func @transform_3(%arg0: i32) -> (i32, i32) {
    %c0_i32 = arith.constant 0 : i32
    %c0_i32_0 = arith.constant 0 : i32
    %c0_i32_1 = arith.constant 0 : i32
    return %c0_i32, %c0_i32_0 : i32, i32
  }
  func.func @transform_4(%arg0: i32) -> (i32, i32) {
    %c0_i32 = arith.constant 0 : i32
    %c0_i32_0 = arith.constant 0 : i32
    %c0_i32_1 = arith.constant 0 : i32
    return %c0_i32, %c0_i32_0 : i32, i32
  }
  func.func @transform_5(%arg0: i32) -> (i32, i32) {
    %c0_i32 = arith.constant 0 : i32
    %c0_i32_0 = arith.constant 0 : i32
    return %c0_i32, %arg0 : i32, i32
  }
}

</mosaic_0001>

<bundles_post_ra>
// kernel: tpu_custom_call.1
= control target key start
LH: loop header
LB: loop body
LE: loop exit
PB: predicated region body
PF: predicated region fallthrough
CT: control target
= control target key end

     0   :  { %vm66_vm0 = vcmask 130048   ;;  %v442_v2 = vmov 0   ;;  %s593_s0 = inlined_call_operand.vmem [shape: f32[8,16], index: 0, kind: input, shape index: {}]   ;;  %s594_s1 = inlined_call_operand.vmem [shape: f32[32,16], index: 1, kind: input, shape index: {}]   ;;  %s595_s2 = inlined_call_operand.vmem [shape: f32[32,1], index: 2, kind: input, shape index: {}]   ;;  %s596_s3 = inlined_call_operand.vmem [shape: f32[1,32], index: 3, kind: input, shape index: {}]   ;;  %s597_s4 = inlined_call_operand.<no memory space> [shape: f32[1,1], index: 4, kind: input, shape index: {}]   ;;  %s598_s5 = inlined_call_operand.hbm [shape: f32[1,8], index: 5, kind: output, shape index: {}]  }
   0x1   :  { %v37_v0 = vld [vmem:[%s593_s0 + $0x78] sm:$0xff]  ;;  %v36_v1 = vld [vmem:[%s593_s0 + $0x70] sm:$0xff]  ;;  %415 = vset.pattern.permute.xlu1 %v442_v2  ;;  %414 = vset.pattern.permute.xlu0 %v442_v2  ;;  %v35_v3 = vld [vmem:[%s593_s0 + $0x68] sm:$0xff] }
   0x2   :  { %361 = vmatprep.subr.msk.mxu0 %vm66_vm0, %v37_v0  ;;  %v38_v4 = vld [vmem:[%s594_s1] sm:$0xff]  ;;  %v45_v5 = vld [vmem:[%s595_s2 + $0x18] sm:$0xff]  ;;  %v43_v6 = vld [vmem:[%s595_s2 + $0x8] sm:$0xff] }
   0x3   :  { %362 = vmatpush3.xpose.msk.msra.mxu0 %vm66_vm0, %v37_v0  ;;  %393 = vmatprep.mubr.msk.f32.mxu0 %vm66_vm0, %v38_v4  ;;  %v34_v7 = vld [vmem:[%s593_s0 + $0x60] sm:$0xff]  ;;  %v44_v8 = vld [vmem:[%s595_s2 + $0x10] sm:$0xff] }
   0x4   :  { %363 = vmatprep.subr.msk.mxu0 %vm66_vm0, %v36_v1  ;;  %63 = vperm.xlu0 %414, %v45_v5  }
   0x5   :  { %53 = vperm.xlu1 %415, %v43_v6  }
   0x7   :  { %364 = vmatpush3.xpose.msk.msra.mxu0 %vm66_vm0, %v36_v1 }
   0x8   :  { %365 = vmatprep.subr.msk.mxu0 %vm66_vm0, %v35_v3 }
   0x9   :  { %11 = vsyncpa [#allocation4], 0  ;;  %v42_v9 = vld [vmem:[%s595_s2] sm:$0xff]  ;;  %58 = vperm.xlu0 %414, %v44_v8   ;;  %v33_v10 = vld [vmem:[%s593_s0 + $0x58] sm:$0xff]  ;;  %v443_v25 = vmov 0.0   ;;  %vm444_vm1 = vmmov 0   ;;  %v218_v43 = vstv %s597_s4 }
   0xa   :  { %48 = vperm.xlu1 %415, %v42_v9   ;;  %v32_v11 = vld [vmem:[%s593_s0 + $0x50] sm:$0xff]  ;;  %v31_v12 = vld [vmem:[%s593_s0 + $0x48] sm:$0xff]  ;;  %v30_v13 = vld [vmem:[%s593_s0 + $0x40] sm:$0xff]  ;;  %399 = vmatprep.subr.mxu1 %v443_v25  ;;  %vm219_vm2 = vcmask 261120   ;;  %s445_s16 = smov [#allocation3]  }
   0xb   :  { %366 = vmatpush3.xpose.msk.msra.mxu0 %vm66_vm0, %v35_v3  ;;  %v29_v14 = vld [vmem:[%s593_s0 + $0x38] sm:$0xff]  ;;  %v28_v15 = vld [vmem:[%s593_s0 + $0x30] sm:$0xff]  ;;  %v27_v16 = vld [vmem:[%s593_s0 + $0x28] sm:$0xff]  ;;  %407 = vmatprep.mubr.msk.f32.mxu1 %vm444_vm1, %v443_v25  ;;  %s306_s17 = sshll.u32 %s445_s16, 4  ;;  %s307_s17 = int_to_ptr.vmem [resolvable:$true] %s306_s17 }
   0xc   :  { %367 = vmatprep.subr.msk.mxu0 %vm66_vm0, %v34_v7  ;;  %v26_v17 = vld [vmem:[%s593_s0 + $0x20] sm:$0xff]  ;;  %v25_v18 = vld [vmem:[%s593_s0 + $0x18] sm:$0xff]  ;;  %v24_v19 = vld [vmem:[%s593_s0 + $0x10] sm:$0xff]  ;;  %s424_s18 = scalar_lea.vmem %s307_s17, 32  ;;  %p425_p1 = scmp.lt.s32.totalorder %s307_s17, %s307_s17 }
   0xd   :  { %v23_v20 = vld [vmem:[%s593_s0 + $0x8] sm:$0xff]  ;;  %v22_v21 = vld [vmem:[%s593_s0] sm:$0xff]  ;;  %v40_v23 = vld [vmem:[%s594_s1 + $0x10] sm:$0xff] }
   0xe   :  { %v39_v22 = vld [vmem:[%s594_s1 + $0x8] sm:$0xff]  ;;  %v41_v24 = vld [vmem:[%s594_s1 + $0x18] sm:$0xff]  ;;  %v216_v42 = vld [vmem:[%s596_s3] sm:$0x1]  ;;  %s420_s3 = scalar_lea.vmem %s307_s17, 16 }
   0xf   :  { %368 = vmatpush3.xpose.msk.msra.mxu0 %vm66_vm0, %v34_v7  ;;  %p421_p0 = scmp.ne.s32.totalorder %s307_s17, %s420_s3  ;;  %p426_p2 = scmp.lt.s32.totalorder %s424_s18, %s420_s3 }
  0x10   :  { %369 = vmatprep.subr.msk.mxu0 %vm66_vm0, %v33_v10 }
  0x11   :  { %p427_p3 = por %p426_p2, %p425_p1 }
  0x13   :  { %370 = vmatpush3.xpose.msk.msra.mxu0 %vm66_vm0, %v33_v10  ;;  %p428_p4 = pnand %p427_p3, %p421_p0 }
  0x14   :  { %371 = vmatprep.subr.msk.mxu0 %vm66_vm0, %v32_v11 }
  0x17   :  { %372 = vmatpush3.xpose.msk.msra.mxu0 %vm66_vm0, %v32_v11 }
  0x18   :  { %373 = vmatprep.subr.msk.mxu0 %vm66_vm0, %v31_v12 }
  0x1b   :  { %374 = vmatpush3.xpose.msk.msra.mxu0 %vm66_vm0, %v31_v12 }
  0x1c   :  { %375 = vmatprep.subr.msk.mxu0 %vm66_vm0, %v30_v13 }
  0x1f   :  { %376 = vmatpush3.xpose.msk.msra.mxu0 %vm66_vm0, %v30_v13 }
  0x20   :  { %377 = vmatprep.subr.msk.mxu0 %vm66_vm0, %v29_v14 }
  0x23   :  { %378 = vmatpush3.xpose.msk.msra.mxu0 %vm66_vm0, %v29_v14 }
  0x24   :  { %379 = vmatprep.subr.msk.mxu0 %vm66_vm0, %v28_v15 }
  0x27   :  { %380 = vmatpush3.xpose.msk.msra.mxu0 %vm66_vm0, %v28_v15 }
  0x28   :  { %381 = vmatprep.subr.msk.mxu0 %vm66_vm0, %v27_v16 }
  0x2b   :  { %382 = vmatpush3.xpose.msk.msra.mxu0 %vm66_vm0, %v27_v16 }
  0x2c   :  { %383 = vmatprep.subr.msk.mxu0 %vm66_vm0, %v26_v17 }
  0x2f   :  { %384 = vmatpush3.xpose.msk.msra.mxu0 %vm66_vm0, %v26_v17 }
  0x30   :  { %385 = vmatprep.subr.msk.mxu0 %vm66_vm0, %v25_v18 }
  0x33   :  { %386 = vmatpush3.xpose.msk.msra.mxu0 %vm66_vm0, %v25_v18 }
  0x34   :  { %387 = vmatprep.subr.msk.mxu0 %vm66_vm0, %v24_v19 }
  0x37   :  { %388 = vmatpush3.xpose.msk.msra.mxu0 %vm66_vm0, %v24_v19 }
  0x38   :  { %389 = vmatprep.subr.msk.mxu0 %vm66_vm0, %v23_v20 }
  0x3b   :  { %390 = vmatpush3.xpose.msk.msra.mxu0 %vm66_vm0, %v23_v20 }
  0x3c   :  { %391 = vmatprep.subr.msk.mxu0 %vm66_vm0, %v22_v21 }
  0x3f   :  { %392 = vmatpush3.xpose.msk.msra.mxu0 %vm66_vm0, %v22_v21 }
  0x42   :  { %394 = vmatmul.mubr.msk.f32.vlgmr.msra.gmra.mxu0 %vm66_vm0, %v39_v22 }
  0x43   :  { %396 = vmatprep.mubr.msk.f32.mxu0 %vm66_vm0, %v40_v23 }
  0x46   :  { %397 = vmatmul.mubr.msk.f32.gmra.mxu0 %vm66_vm0, %v41_v24 }
  0x7f   :  { %v64_v26 = vpop.permute.xlu0 %63 }
  0x80   :  { %v54_v27 = vpop.permute.xlu1 %53 }
  0x84   :  { %v59_v31 = vpop.permute.xlu0 %58 }
  0x85   :  { %v49_v33 = vpop.permute.xlu1 %48 }
 0x102   :  { %v395_v28 = vpop.f32.mrf.mxu0 }
 0x103   :  { %v199_v35 = vadd.f32 %v395_v28, %v54_v27 }
 0x104   :  { %v193_v29 = vpop.f32.mrf.mxu0 }
 0x105   :  { %v194_v38 = vadd.f32 %v193_v29, %v49_v33  ;;  %v213_v40 = vmax.f32 %v199_v35, 0.0 }
 0x106   :  { %v398_v30 = vpop.f32.mrf.mxu0 }
 0x107   :  { %v209_v32 = vadd.f32 %v398_v30, %v64_v26  ;;  %v212_v41 = vmax.f32 %v194_v38, 0.0 }
 0x108   :  { %v203_v34 = vpop.f32.mrf.mxu0 }
 0x109   :  { %v215_v36 = vmax.f32 %v209_v32, 0.0  ;;  %v204_v37 = vadd.f32 %v203_v34, %v59_v31 }
 0x10b   :  { %v214_v39 = vmax.f32 %v204_v37, 0.0  ;;  %400 = vmatpush3.msra.mxu1 %v215_v36 }
 0x10c   :  { %401 = vmatprep.subr.mxu1 %v443_v25 }
 0x10d   :  { %402 = vmatpush3.msra.mxu1 %v214_v39 }
 0x10e   :  { %403 = vmatprep.subr.mxu1 %v443_v25 }
 0x10f   :  { %404 = vmatpush3.msra.mxu1 %v213_v40 }
 0x110   :  { %405 = vmatprep.subr.mxu1 %v443_v25 }
 0x111   :  { %406 = vmatpush3.msra.mxu1 %v212_v41 }
 0x112   :  { %408 = vmatmul.mubr.msk.f32.vlgmr.msra.gmra.mxu1 %vm219_vm2, %v216_v42 }
 0x1d2   :  { %v289_v44 = vpop.f32.mrf.mxu1 }
 0x1d3   :  { %v290_v45 = vadd.f32 %v289_v44, %v218_v43 }
 0x1d4   :  { %v409_v46 = vpop.f32.mrf.mxu1 }
 0x1d5   :  { %v335_v47 = vmul.f32 -1.442695, %v290_v45 }
 0x1d7   :  { %416 = vpow2.f32 %v335_v47 }
 0x1e4   :  { %v417_v48 = vpop.eup %416 }
 0x1e5   :  { %v296_v49 = vadd.f32 1.0, %v417_v48 }
 0x1e7   :  { %418 = vrcp.f32 %v296_v49 }
 0x1f4   :  { %v419_v50 = vpop.eup %418 }
 0x1f5   :  { %299 = vst [vmem:[#allocation3] sm:$0x1] %v419_v50 }
 0x1f6   :  { %431 = shalt.err (!%p428_p4)
}
 0x1f7   :  { %309 = dma.vmem_to_hbm [thread:$0]  %s307_s17, 16, %s598_s5, [#allocation4]  }
 0x1f8   :  { %440 = dma.done.wait [#allocation4], 16  }
 0x1f9   :  { %441 = vsyncadd [#allocation4], 4294967280 }
 0x1fa   :  { %313 = vsyncpa [#allocation4], 1 }

</bundles_post_ra>
